<compile_context>
chip_gen: v7x
topology: tpu7x:2x2x1
jax: 0.10.0
libtpu: 0.0.40
codegen_flags: <defaults>
</compile_context>

<pallas_src>
import jax
import jax.numpy as jnp
from jax import lax
from jax.experimental import pallas as pl
from jax.experimental.pallas import tpu as pltpu


def _rmsnorm_kernel(x_ref, g_ref, o_ref):
    # x_ref: (TB, C, TL) block; g_ref: (1, C, 1) f32 with sqrt(C) pre-folded.
    xf = x_ref[...].astype(jnp.float32)

    # Sum of squares over the channel axis, accumulated in f32.
    sumsq = jnp.sum(xf * xf, axis=1, keepdims=True)          # (TB, 1, TL)

    # 1 / max(||x||, 1e-12)  ==  rsqrt(max(sumsq, 1e-24))  (sqrt is monotone).
    inv = lax.rsqrt(jnp.maximum(sumsq, 1e-24))               # EUP rsqrt

    # Keep the scale in f32; cast only at the store (free under the HBM roofline).
    o_ref[...] = (xf * inv * g_ref[...]).astype(o_ref.dtype)


def _vmem_limit_bytes():
    """Chip-aware scoped-VMEM limit (v7x: 64 MiB/TC; v5e/v6e: 128 MiB)."""
    try:
        cap = int(pltpu.get_tpu_info().vmem_capacity_bytes)
    except Exception:
        cap = 64 * 1024 * 1024  # conservative fallback (v7x per-TC)
    return min(int(0.70 * cap), 96 * 1024 * 1024)


def _pick_tiles(B, C, L, itemsize, budget_bytes):
    """Pick (tb, tl, l_pad) so the per-step working set fits the budget.

    Per-element VMEM cost estimate: double-buffered in+out blocks in the
    native dtype (4 * itemsize) plus ~3 f32 temporaries (12 bytes).
    """
    per_elem = 4 * itemsize + 12
    l_pad = -(-L // 128) * 128  # round L up to a lane-dense multiple of 128

    tl = 128
    for cand in (4096, 2048, 1024, 512, 256, 128):
        if cand <= l_pad and l_pad % cand == 0 and C * cand * per_elem <= budget_bytes:
            tl = cand
            break

    # Grow the batch tile until the block reaches a few MiB of DMA per step
    # (diminishing returns beyond that) or the VMEM budget is hit.
    tb = 1
    for cand in range(1, B + 1):
        if B % cand:
            continue
        if cand * C * tl * per_elem > budget_bytes:
            break
        tb = cand
        if cand * C * tl * itemsize >= (4 << 20):
            break
    return tb, tl, l_pad


def rmsnorm(x, g):
    """x: (B, C, L), g: (1, C, 1) -> (B, C, L)"""
    B, C, L = x.shape
    itemsize = jnp.dtype(x.dtype).itemsize

    vmem_limit = _vmem_limit_bytes()
    tb, tl, l_pad = _pick_tiles(B, C, L, itemsize, budget_bytes=(3 * vmem_limit) // 4)

    # Pad L up to the lane-tile multiple so every store is lane-dense and
    # unmasked; pad lanes normalize to 0 and are sliced off afterwards.
    x_in = x if l_pad == L else jnp.pad(x, ((0, 0), (0, 0), (0, l_pad - L)))

    # TODO(synk): fold g * sqrt(C) at parameter-init time (or jit the caller so
    # XLA fuses it) instead of recomputing this tiny op per call.
    g_scaled = g.astype(jnp.float32) * jnp.float32(C) ** 0.5

    out = pl.pallas_call(
        _rmsnorm_kernel,
        out_shape=jax.ShapeDtypeStruct((B, C, l_pad), x.dtype),
        grid_spec=pltpu.PrefetchScalarGridSpec(
            num_scalar_prefetch=0,
            grid=(B // tb, l_pad // tl),
            in_specs=[
                pl.BlockSpec((tb, C, tl), lambda b, l: (b, 0, l)),
                pl.BlockSpec((1, C, 1), lambda b, l: (0, 0, 0)),
            ],
            out_specs=pl.BlockSpec((tb, C, tl), lambda b, l: (b, 0, l)),
        ),
        compiler_params=pltpu.CompilerParams(
            dimension_semantics=("parallel", "parallel"),
            vmem_limit_bytes=vmem_limit,
        ),
    )(x_in, g_scaled)

    return out if l_pad == L else out[:, :, :L]


def rmsnorm_ref(x, g):
    """Pure-JAX reference matching F.normalize(x, dim=1) * g * sqrt(C)."""
    c = x.shape[1]
    xf = x.astype(jnp.float32)
    norm = jnp.maximum(jnp.sqrt(jnp.sum(xf * xf, axis=1, keepdims=True)), 1e-12)
    return ((xf / norm) * g.astype(jnp.float32) * (c ** 0.5)).astype(x.dtype)


if __name__ == "__main__":
    key = jax.random.PRNGKey(0)

    # Small shapes consistent with the module: batch=2, channels=4, length=16.
    B, C, L = 2, 4, 16
    x = jax.random.normal(key, (B, C, L), dtype=jnp.float32)
    g = jnp.ones((1, C, 1), dtype=jnp.float32)  # module init: g = ones(1, dim, 1)

    out = jax.block_until_ready(rmsnorm(x, g))
    ref = rmsnorm_ref(x, g)
    assert out.shape == (B, C, L)
    assert jnp.allclose(out, ref, atol=1e-5, rtol=1e-5), "mismatch vs reference"

    # Lane-tiled path with batch tiling and a non-trivial g.
    x2 = jax.random.normal(jax.random.PRNGKey(1), (2, 4, 256), dtype=jnp.float32)
    g2 = jax.random.normal(jax.random.PRNGKey(2), (1, 4, 1), dtype=jnp.float32)
    out2 = jax.block_until_ready(rmsnorm(x2, g2))
    assert jnp.allclose(out2, rmsnorm_ref(x2, g2), atol=1e-5, rtol=1e-5), \
        "mismatch vs reference (tiled path)"

    # bf16 input path (f32 compute inside the kernel, cast on store).
    x3 = jax.random.normal(jax.random.PRNGKey(3), (2, 8, 128), dtype=jnp.bfloat16)
    g3 = jnp.ones((1, 8, 1), dtype=jnp.float32)
    out3 = jax.block_until_ready(rmsnorm(x3, g3))
    ref3 = rmsnorm_ref(x3, g3)
    assert jnp.allclose(out3.astype(jnp.float32), ref3.astype(jnp.float32),
                        atol=2e-2, rtol=2e-2), "mismatch vs reference (bf16 path)"

    print("KERNEL_OK")
</pallas_src>

<mosaic_0001>
module attributes {stable_mosaic.version = 11 : i64} {
  func.func @_rmsnorm_kernel(%arg0: i32, %arg1: i32, %arg2: memref<2x4x128xf32, #tpu.memory_space<vmem>>, %arg3: memref<1x4x1xf32, #tpu.memory_space<vmem>>, %arg4: memref<2x4x128xf32, #tpu.memory_space<vmem>>) attributes {dimension_semantics = [#tpu.dimension_semantics<parallel>, #tpu.dimension_semantics<parallel>], iteration_bounds = array<i64: 1, 1>, scalar_prefetch = 0 : i64, scratch_operands = 0 : i64, tpu.core_type = #tpu.core_type<tc>, window_params = [{transform_indices = @transform_0, window_bounds = array<i64: 2, 4, 128>}, {pipeline_mode = #tpu.pipeline_mode<synchronous>, transform_indices = @transform_1, window_bounds = array<i64: 1, 4, 1>}, {transform_indices = @transform_2, window_bounds = array<i64: 2, 4, 128>}]} {
    %c0 = arith.constant 0 : index
    %c0_0 = arith.constant 0 : index
    %c0_1 = arith.constant 0 : index
    %0 = vector.load %arg2[%c0, %c0_0, %c0_1] : memref<2x4x128xf32, #tpu.memory_space<vmem>>, vector<2x4x128xf32>
    %1 = arith.mulf %0, %0 : vector<2x4x128xf32>
    %cst = arith.constant dense<0.000000e+00> : vector<2x128xf32>
    %2 = vector.multi_reduction <add>, %1, %cst [1] : vector<2x4x128xf32> to vector<2x128xf32>
    %3 = vector.shape_cast %2 : vector<2x128xf32> to vector<2x1x128xf32>
    %cst_2 = arith.constant 1.000000e-24 : f32
    %4 = vector.broadcast %cst_2 : f32 to vector<2x1x128xf32>
    %5 = arith.maximumf %3, %4 : vector<2x1x128xf32>
    %6 = math.rsqrt %5 : vector<2x1x128xf32>
    %7 = vector.broadcast %6 : vector<2x1x128xf32> to vector<2x4x128xf32>
    %8 = arith.mulf %0, %7 : vector<2x4x128xf32>
    %c0_3 = arith.constant 0 : index
    %c0_4 = arith.constant 0 : index
    %c0_5 = arith.constant 0 : index
    %9 = vector.load %arg3[%c0_3, %c0_4, %c0_5] : memref<1x4x1xf32, #tpu.memory_space<vmem>>, vector<1x4x1xf32>
    %10 = vector.broadcast %9 : vector<1x4x1xf32> to vector<2x4x128xf32>
    %11 = arith.mulf %8, %10 : vector<2x4x128xf32>
    %c0_6 = arith.constant 0 : index
    %c0_7 = arith.constant 0 : index
    %c0_8 = arith.constant 0 : index
    %12 = vector.load %arg4[%c0_6, %c0_7, %c0_8] : memref<2x4x128xf32, #tpu.memory_space<vmem>>, vector<2x4x128xf32>
    tpu.vector_store %arg4[%c0_6, %c0_7, %c0_8], %11 {strides = array<i32>} : memref<2x4x128xf32, #tpu.memory_space<vmem>>, vector<2x4x128xf32>,
    return
  }
  func.func @transform_0(%arg0: i32, %arg1: i32) -> (i32, i32, i32) {
    %c0_i32 = arith.constant 0 : i32
    %c0_i32_0 = arith.constant 0 : i32
    return %arg0, %c0_i32, %arg1 : i32, i32, i32
  }
  func.func @transform_1(%arg0: i32, %arg1: i32) -> (i32, i32, i32) {
    %c0_i32 = arith.constant 0 : i32
    %c0_i32_0 = arith.constant 0 : i32
    %c0_i32_1 = arith.constant 0 : i32
    %c0_i32_2 = arith.constant 0 : i32
    return %c0_i32, %c0_i32_0, %c0_i32_1 : i32, i32, i32
  }
  func.func @transform_2(%arg0: i32, %arg1: i32) -> (i32, i32, i32) {
    %c0_i32 = arith.constant 0 : i32
    %c0_i32_0 = arith.constant 0 : i32
    return %arg0, %c0_i32, %arg1 : i32, i32, i32
  }
}

</mosaic_0001>

<bundles_post_ra>
// kernel: tpu_custom_call.1
= control target key start
LH: loop header
LB: loop body
LE: loop exit
PB: predicated region body
PF: predicated region fallthrough
CT: control target
= control target key end

     0   :  { %7 = vsyncpa [#allocation3], 0  ;;  %s189_s0 = inlined_call_operand.hbm [shape: f32[2,4,128], index: 0, kind: input, shape index: {}]   ;;  %s190_s1 = inlined_call_operand.vmem [shape: f32[1,4,1], index: 1, kind: input, shape index: {}]   ;;  %s191_s2 = inlined_call_operand.hbm [shape: f32[2,4,128], index: 2, kind: output, shape index: {}]  }
   0x1   :  { %8 = vsyncpa [#allocation4], 0  ;;  %s136_s9 = smov [#allocation2]   ;;  %s88_s13 = scalar_lea.hbm %s189_s0, 128 }
   0x2   :  { %s14_s10 = sshll.u32 %s136_s9, 4  ;;  %p89_p0 = scmp.ne.s32.totalorder %s189_s0, %s88_s13  ;;  %s15_s10 = int_to_ptr.vmem [resolvable:$true] %s14_s10 }
   0x3   :  { %p92_p1 = scmp.lt.u32.totalorder %s88_s13, %s189_s0 }
   0x5   :  { %p94_p2 = pnand %p92_p1, %p89_p0 }
   0x7   :  { %97 = shalt.err (!%p94_p2)
}
   0x8   :  { %s98_s18 = scalar_lea.vmem %s15_s10, 128  ;;  %p103_p4 = scmp.lt.s32.totalorder %s15_s10, %s15_s10 }
   0x9   :  { %p99_p3 = scmp.ne.s32.totalorder %s15_s10, %s98_s18  ;;  %p104_p5 = scmp.lt.s32.totalorder %s98_s18, %s98_s18 }
   0xb   :  { %p105_p6 = por %p104_p5, %p103_p4 }
   0xd   :  { %p106_p7 = pnand %p105_p6, %p99_p3 }
   0xf   :  { %109 = shalt.err (!%p106_p7)
}
  0x10   :  { %s137_s19 = smov 64   ;;  %s138_s20 = smov 4  }
  0x11   :  { %20 = dma.hbm_to_vmem [thread:$0]  %s189_s0, 128, %s15_s10, [#allocation3], %s137_s19, %s137_s19, %s138_s20  }
  0x12   :  { %132 = dma.done.wait [#allocation3], 128  }
  0x13   :  { %133 = vsyncadd [#allocation3], 4294967168  ;;  %v139_v0 = vmov 0   ;;  %v51_v1 = vld [vmem:[%s190_s1] sm:$0xf]  ;;  %vm30_vm0 = vcmask 1043456  }
  0x14   :  { %83 = vset.pattern.permute.xlu0 %v139_v0  ;;  %v26_v2 = vld [vmem:[#allocation2] sm:$0xf]  ;;  %v27_v3 = vld [vmem:[#allocation2 + $0x4] sm:$0xf]  ;;  %s140_s0 = smov [#allocation5]  }
  0x15   :  { %54 = vperm.xlu0 %83, %v51_v1   ;;  %v28_v4 = vmul.f32 %v26_v2, %v26_v2  ;;  %v29_v5 = vmul.f32 %v27_v3, %v27_v3  ;;  %s66_s1 = sshll.u32 %s140_s0, 4  ;;  %s67_s1 = int_to_ptr.vmem [resolvable:$true] %s66_s1 }
  0x16   :  { %s110_s25 = scalar_lea.vmem %s67_s1, 128  ;;  %p115_p9 = scmp.lt.s32.totalorder %s67_s1, %s67_s1 }
  0x17   :  { %v31_v6 = vsel %vm30_vm0, %v28_v4, 0.0  ;;  %v38_v7 = vsel %vm30_vm0, %v29_v5, 0.0  ;;  %p111_p8 = scmp.ne.s32.totalorder %s67_s1, %s110_s25  ;;  %p116_p10 = scmp.lt.s32.totalorder %s110_s25, %s110_s25 }
  0x18   :  { %v32_v8 = vrot.slane %v31_v6, 4  ;;  %v39_v9 = vrot.slane %v38_v7, 4 }
  0x19   :  { %p117_p11 = por %p116_p10, %p115_p9 }
  0x1a   :  { %v33_v10 = vadd.f32 %v32_v8, %v31_v6  ;;  %v40_v11 = vadd.f32 %v39_v9, %v38_v7 }
  0x1b   :  { %p118_p12 = pnand %p117_p11, %p111_p8 }
  0x1c   :  { %v34_v12 = vrot.slane %v33_v10, 2  ;;  %v41_v13 = vrot.slane %v40_v11, 2 }
  0x1e   :  { %v35_v14 = vadd.f32 %v34_v12, %v33_v10  ;;  %v42_v15 = vadd.f32 %v41_v13, %v40_v11 }
  0x20   :  { %v36_v16 = vrot.slane %v35_v14, 1  ;;  %v43_v17 = vrot.slane %v42_v15, 1 }
  0x22   :  { %v37_v18 = vadd.f32 %v36_v16, %v35_v14  ;;  %v44_v19 = vadd.f32 %v43_v17, %v42_v15 }
  0x24   :  { %v45_v20 = vmax.f32 %v37_v18, 1e-24  ;;  %v46_v21 = vmax.f32 %v44_v19, 1e-24 }
  0x26   :  { %84 = vrsqrt.f32 %v45_v20 }
  0x27   :  { %86 = vrsqrt.f32 %v46_v21 }
  0x30   :  { %v85_v22 = vpop.eup %84 }
  0x31   :  { %v87_v23 = vpop.eup %86  ;;  %v49_v24 = vmul.f32 %v85_v22, %v26_v2 }
  0x32   :  { %v50_v25 = vmul.f32 %v87_v23, %v27_v3 }
  0x94   :  { %v55_v26 = vpop.permute.xlu0 %54 }
  0x95   :  { %v57_v27 = vmul.f32 %v55_v26, %v49_v24  ;;  %v58_v28 = vmul.f32 %v55_v26, %v50_v25 }
  0x97   :  { %59 = vst [vmem:[#allocation5] sm:$0xf] %v57_v27  ;;  %60 = vst [vmem:[#allocation5 + $0x4] sm:$0xf] %v58_v28 }
  0x98   :  { %121 = shalt.err (!%p118_p12)
}
  0x99   :  { %s122_s28 = scalar_lea.hbm %s191_s2, 128 }
  0x9a   :  { %p123_p13 = scmp.ne.s32.totalorder %s191_s2, %s122_s28  ;;  %p126_p0 = scmp.lt.u32.totalorder %s122_s28, %s191_s2 }
  0x9c   :  { %p128_p1 = pnand %p126_p0, %p123_p13 }
  0x9e   :  { %131 = shalt.err (!%p128_p1)
}
  0x9f   :  { %72 = dma.vmem_to_hbm [thread:$0]  %s67_s1, 128, %s191_s2, [#allocation4], %s137_s19, %s137_s19, %s138_s20  }
  0xa0   :  { %134 = dma.done.wait [#allocation4], 128  }
  0xa1   :  { %135 = vsyncadd [#allocation4], 4294967168 }
  0xa2   :  { %76 = vsyncpa [#allocation3], 1 }
  0xa3   :  { %77 = vsyncpa [#allocation4], 1 }

</bundles_post_ra>
